<compile_context>
chip_gen: v5e
topology: v5e:2x2
jax: 0.10.0
libtpu: 0.0.40
codegen_flags: <defaults>
</compile_context>

<pallas_src>
import functools
import math

import jax
import jax.numpy as jnp
from jax import lax
from jax.experimental import pallas as pl
from jax.experimental.pallas import tpu as pltpu

MIN_NORM = 1e-15
BALL_EPS_F32 = 4e-3  # Poincare-ball boundary epsilon for float32 (HGCN)


def _round_up(v, m):
    return ((v + m - 1) // m) * m


# ---------------- hyperbolic math (wrapper / reference side) ----------------

def _row_norm_sq(x):
    return jnp.sum(x * x, axis=-1, keepdims=True)


def _artanh(x):
    x = jnp.clip(x, -1.0 + 1e-7, 1.0 - 1e-7)
    return 0.5 * (jnp.log1p(x) - jnp.log1p(-x))


def _proj(x, c):
    sqrt_c = math.sqrt(c)
    norm = jnp.maximum(jnp.sqrt(_row_norm_sq(x)), MIN_NORM)
    maxnorm = (1.0 - BALL_EPS_F32) / sqrt_c
    scale = jnp.where(norm > maxnorm, maxnorm / norm, 1.0)
    return x * scale


def _expmap0(u, c):
    sqrt_c = math.sqrt(c)
    u_norm = jnp.maximum(jnp.sqrt(_row_norm_sq(u)), MIN_NORM)
    return jnp.tanh(sqrt_c * u_norm) * u / (sqrt_c * u_norm)


def _mobius_add(x, y, c):
    x2 = _row_norm_sq(x)
    y2 = _row_norm_sq(y)
    xy = jnp.sum(x * y, axis=-1, keepdims=True)
    num = (1.0 + 2.0 * c * xy + c * y2) * x + (1.0 - c * x2) * y
    denom = 1.0 + 2.0 * c * xy + c * c * x2 * y2
    return num / jnp.maximum(denom, MIN_NORM)


def _mobius_matvec_from_mx(mx, x, c):
    sqrt_c = math.sqrt(c)
    x_norm = jnp.maximum(jnp.sqrt(_row_norm_sq(x)), MIN_NORM)
    mx_norm = jnp.maximum(jnp.sqrt(_row_norm_sq(mx)), MIN_NORM)
    res_c = (jnp.tanh(mx_norm / x_norm * _artanh(sqrt_c * x_norm))
             * mx / (mx_norm * sqrt_c))
    cond = jnp.all(mx == 0.0, axis=-1, keepdims=True)
    return jnp.where(cond, jnp.zeros_like(res_c), res_c)


# --------------------------------- kernel -----------------------------------

def hyp_linear_kernel(x_ref, w_ref, hb_ref, const_ref, o_ref,
                      mx_acc, xsq_acc, *, c, use_bias):
    sqrt_c = math.sqrt(c)
    inv_sqrt_c = 1.0 / sqrt_c

    k = pl.program_id(1)
    nk = pl.num_programs(1)

    @pl.when(k == 0)
    def _():
        mx_acc[...] = jnp.zeros_like(mx_acc)
        xsq_acc[...] = jnp.zeros_like(xsq_acc)

    x = x_ref[...]                                    # (T, tile_k) caller dtype
    # MXU consumes the pre-transposed (bf16 by default) weight directly.
    mx_acc[...] += jnp.dot(x.astype(w_ref.dtype), w_ref[...],
                           preferred_element_type=jnp.float32)
    x32 = x.astype(jnp.float32)
    xsq_acc[...] += jnp.sum(x32 * x32, axis=-1, keepdims=True)

    @pl.when(k == nk - 1)
    def _():
        mx = mx_acc[...]                              # (T, Dout_p) f32
        x_sq = xsq_acc[...]                           # (T, 1) f32
        mx_sq = jnp.sum(mx * mx, axis=-1, keepdims=True)

        # EUP rsqrt instead of sqrt + divide (frees VALU slots).
        inv_x_norm = lax.rsqrt(jnp.maximum(x_sq, MIN_NORM * MIN_NORM))
        inv_mx_norm = lax.rsqrt(jnp.maximum(mx_sq, MIN_NORM * MIN_NORM))
        x_norm = x_sq * inv_x_norm
        mx_norm = mx_sq * inv_mx_norm

        # artanh with a single transcendental: 0.5*log((1+a)/(1-a))
        a = jnp.clip(sqrt_c * x_norm, -1.0 + 1e-7, 1.0 - 1e-7)
        artanh = 0.5 * jnp.log((1.0 + a) / (1.0 - a))

        t = jnp.tanh((mx_norm * inv_x_norm) * artanh)          # (T, 1)
        # Fused first proj: ||mx * scale|| == t / sqrt_c analytically, so
        # clamping t at (1 - eps) IS the ball projection (no Dout reduction).
        t = jnp.minimum(t, 1.0 - BALL_EPS_F32)
        # zero-row guard (reference: all(mx == 0)); reuse mx_sq
        t = jnp.where(mx_sq == 0.0, 0.0, t)

        res = mx * (t * (inv_mx_norm * inv_sqrt_c))            # (T, Dout_p)

        if use_bias:
            hb = hb_ref[...]                                   # (1, Dout_p) f32
            y2 = const_ref[0]                                  # ||hb||^2 (SMEM)
            x2 = (t * t) * (1.0 / c)                           # ||res||^2 analytic
            xy = jnp.sum(res * hb, axis=-1, keepdims=True)
            two_c_xy = (2.0 * c) * xy
            num = (1.0 + two_c_xy + c * y2) * res + (1.0 - c * x2) * hb
            denom = 1.0 + two_c_xy + (c * c) * (x2 * y2)
            res = num * pl.reciprocal(jnp.maximum(denom, MIN_NORM), approx=True)
            # second proj
            r_sq = jnp.sum(res * res, axis=-1, keepdims=True)
            inv_r = lax.rsqrt(jnp.maximum(r_sq, MIN_NORM * MIN_NORM))
            maxnorm = (1.0 - BALL_EPS_F32) * inv_sqrt_c
            res = res * jnp.where(r_sq > maxnorm * maxnorm, maxnorm * inv_r, 1.0)

        o_ref[...] = res.astype(o_ref.dtype)


# -------------------------------- wrapper ------------------------------------

def hyp_linear(x, weight, bias, *, c=1.0, use_bias=True,
               matmul_dtype=jnp.bfloat16, max_tile_n=1024):
    """HypLinear forward. x: (N, Din), weight: (Dout, Din), bias: (Dout,).

    matmul_dtype: dtype the weight (wrapper-side) and x tile (in-kernel) are
    cast to for the MXU; bf16 by default (f32 matmul is emulated on TPU MXUs).
    Accumulation is always f32. Pass None to keep the matmul in f32.
    """
    n, din = x.shape
    dout = weight.shape[0]
    c = float(c)
    out_dtype = x.dtype
    w_dtype = jnp.float32 if matmul_dtype is None else matmul_dtype

    # Feature dims lane-aligned to 128 (lane-dense loads, unmasked stores).
    # (256-alignment would fill the 256-wide v6e/v7x MXU better, but doubles
    # the Dout-wide VPU/DMA epilogue work for small layers, so keep 128.)
    din_p = _round_up(din, 128)
    dout_p = _round_up(dout, 128)

    # --- VMEM budget: ~80% of physical per-TC VMEM (v7x only has 64 MiB) ---
    try:
        vmem_budget = int(pltpu.get_tpu_info().vmem_capacity_bytes * 0.8)
    except Exception:
        vmem_budget = 48 * 1024 * 1024  # conservative: fits v7x

    x_bytes = jnp.dtype(x.dtype).itemsize
    w_bytes = jnp.dtype(w_dtype).itemsize
    o_bytes = jnp.dtype(out_dtype).itemsize

    # --- K (contraction) tiling: bound the weight block's VMEM residency ---
    m = din_p // 128
    k_divisors = [128 * d for d in range(1, m + 1) if m % d == 0]
    tile_k = k_divisors[0]
    for tk in k_divisors:
        if 2 * tk * dout_p * w_bytes <= vmem_budget // 3:
            tile_k = tk
    num_k = din_p // tile_k

    # --- Row tiling: as large as fits after the weight block + epilogue temps
    w_resident = 2 * tile_k * dout_p * w_bytes
    per_row = (2 * tile_k * x_bytes          # double-buffered x tile
               + 2 * dout_p * o_bytes        # double-buffered out tile
               + 4 * dout_p * 4              # mx accumulator + epilogue temps
               + 512)                        # (T,1) scratches / slack
    avail = max(vmem_budget - w_resident - (1 << 20), 8 * per_row)
    tile_n = max(8, min(max_tile_n, (avail // per_row) // 8 * 8))
    tile_n = min(tile_n, _round_up(n, 8))
    # v7x megacore: give the 'parallel' row axis at least two tiles to split.
    if n >= 64 and pl.cdiv(n, tile_n) == 1:
        tile_n = _round_up(pl.cdiv(n, 2), 8)

    grid = (pl.cdiv(n, tile_n), num_k)

    # --- Operand prep: pad only when needed, padding is exact zeros ---
    x_p = x if din_p == din else jnp.pad(x, ((0, 0), (0, din_p - din)))
    w_t = weight.astype(w_dtype).T                       # (Din, Dout)
    if (din_p, dout_p) != (din, dout):
        w_t = jnp.pad(w_t, ((0, din_p - din), (0, dout_p - dout)))

    # Row-independent bias path (proj_tan0 -> expmap0 -> proj) hoisted here.
    if use_bias:
        hyp_bias = _proj(_expmap0(bias.reshape(1, dout).astype(jnp.float32), c), c)
    else:
        hyp_bias = jnp.zeros((1, dout), jnp.float32)
    hb_p = (hyp_bias if dout_p == dout
            else jnp.pad(hyp_bias, ((0, 0), (0, dout_p - dout))))
    consts = jnp.sum(hyp_bias * hyp_bias).reshape(1).astype(jnp.float32)  # ||hb||^2

    kernel = functools.partial(hyp_linear_kernel, c=c, use_bias=use_bias)

    def run(single_buffer_invariant):
        def inv_spec(shape, index_map):
            if single_buffer_invariant:
                return pl.BlockSpec(shape, index_map, pipeline_mode=pl.Buffered(1))
            return pl.BlockSpec(shape, index_map)

        w_spec = (inv_spec((tile_k, dout_p), lambda i, k: (k, 0)) if num_k == 1
                  else pl.BlockSpec((tile_k, dout_p), lambda i, k: (k, 0)))
        in_specs = [
            pl.BlockSpec((tile_n, tile_k), lambda i, k: (i, k)),   # x
            w_spec,                                                # weight
            inv_spec((1, dout_p), lambda i, k: (0, 0)),            # hyp bias
            pl.BlockSpec(memory_space=pltpu.MemorySpace.SMEM),     # ||hb||^2
        ]
        return pl.pallas_call(
            kernel,
            out_shape=jax.ShapeDtypeStruct((n, dout_p), out_dtype),
            grid=grid,
            in_specs=in_specs,
            out_specs=pl.BlockSpec((tile_n, dout_p), lambda i, k: (i, 0)),
            scratch_shapes=[pltpu.VMEM((tile_n, dout_p), jnp.float32),
                            pltpu.VMEM((tile_n, 1), jnp.float32)],
            compiler_params=pltpu.CompilerParams(
                dimension_semantics=("parallel", "arbitrary"),
                vmem_limit_bytes=vmem_budget,
            ),
        )(x_p, w_t, hb_p, consts)

    try:
        out_p = run(True)    # single-buffer the grid-invariant weight/bias blocks
    except Exception:
        out_p = run(False)   # fallback if pl.Buffered(1) isn't supported

    return out_p if dout_p == dout else out_p[:, :dout]


# --------------------------- pure-JAX reference ------------------------------

def hyp_linear_ref(x, weight, bias, *, c=1.0, use_bias=True):
    x = x.astype(jnp.float32)
    mx = x @ weight.astype(jnp.float32).T
    res = _mobius_matvec_from_mx(mx, x, c)
    res = _proj(res, c)
    if use_bias:
        hb = _proj(_expmap0(bias.reshape(1, -1).astype(jnp.float32), c), c)
        res = _proj(_mobius_add(res, hb, c), c)
    return res


if __name__ == "__main__":
    in_features, out_features, n = 32, 32, 8
    c_curv = 1.0

    key = jax.random.PRNGKey(0)
    kx, kw = jax.random.split(key)

    # xavier_uniform_ with gain=sqrt(2): bound = gain * sqrt(6 / (fan_in+fan_out))
    gain = math.sqrt(2.0)
    bound = gain * math.sqrt(6.0 / (in_features + out_features))
    weight = jax.random.uniform(kw, (out_features, in_features),
                                minval=-bound, maxval=bound, dtype=jnp.float32)
    bias = jnp.full((out_features,), 1e-4, dtype=jnp.float32)

    # small points on the Poincare ball
    x = 0.01 * jax.random.normal(kx, (n, in_features), dtype=jnp.float32)
    x = _proj(x, c_curv)

    ref = hyp_linear_ref(x, weight, bias, c=c_curv, use_bias=True)

    # default path: bf16 MXU with f32 accumulation
    out_bf16 = jax.block_until_ready(
        hyp_linear(x, weight, bias, c=c_curv, use_bias=True))
    assert out_bf16.shape == (n, out_features)
    assert not bool(jnp.isnan(out_bf16).any())
    assert bool(jnp.allclose(out_bf16, ref, atol=1e-3, rtol=5e-2))

    # full-f32 matmul path: tight check against the pure-JAX reference
    out_f32 = jax.block_until_ready(
        hyp_linear(x, weight, bias, c=c_curv, use_bias=True, matmul_dtype=None))
    assert out_f32.shape == (n, out_features)
    assert not bool(jnp.isnan(out_f32).any())
    assert bool(jnp.allclose(out_f32, ref, atol=5e-5, rtol=5e-3))

    print("KERNEL_OK")
</pallas_src>

<mosaic_0001>
module attributes {stable_mosaic.version = 11 : i64} {
  func.func @hyp_linear_kernel(%arg0: i32, %arg1: i32, %arg2: memref<8x128xf32, #tpu.memory_space<vmem>>, %arg3: memref<128x128xbf16, #tpu.memory_space<vmem>>, %arg4: memref<1x128xf32, #tpu.memory_space<vmem>>, %arg5: memref<1xf32, #tpu.memory_space<smem>>, %arg6: memref<8x128xf32, #tpu.memory_space<vmem>>, %arg7: memref<8x128xf32, #tpu.memory_space<vmem>>, %arg8: memref<8x1xf32, #tpu.memory_space<vmem>>) attributes {dimension_semantics = [#tpu.dimension_semantics<parallel>, #tpu.dimension_semantics<arbitrary>], iteration_bounds = array<i64: 1, 1>, scalar_prefetch = 0 : i64, scratch_operands = 2 : i64, tpu.core_type = #tpu.core_type<tc>, window_params = [{transform_indices = @transform_0, window_bounds = array<i64: 8, 128>}, {pipeline_mode = #tpu.pipeline_mode<synchronous>, transform_indices = @transform_1, window_bounds = array<i64: 128, 128>}, {pipeline_mode = #tpu.pipeline_mode<synchronous>, transform_indices = @transform_2, window_bounds = array<i64: 1, 128>}, {transform_indices = @transform_3, window_bounds = array<i64: 1>}, {transform_indices = @transform_4, window_bounds = array<i64: 8, 128>}]} {
    %c0_i32 = arith.constant 0 : i32
    %0 = arith.cmpi eq, %arg1, %c0_i32 : i32
    %1 = arith.extui %0 : i1 to i32
    %c0_i32_0 = arith.constant 0 : i32
    %2 = arith.cmpi ne, %1, %c0_i32_0 : i32
    scf.if %2 {
      %cst_15 = arith.constant 0.000000e+00 : f32
      %19 = vector.broadcast %cst_15 : f32 to vector<8x128xf32>
      %c0_16 = arith.constant 0 : index
      %c0_17 = arith.constant 0 : index
      %20 = vector.load %arg7[%c0_16, %c0_17] : memref<8x128xf32, #tpu.memory_space<vmem>>, vector<8x128xf32>
      tpu.vector_store %arg7[%c0_16, %c0_17], %19 {strides = array<i32>} : memref<8x128xf32, #tpu.memory_space<vmem>>, vector<8x128xf32>,
      %cst_18 = arith.constant 0.000000e+00 : f32
      %21 = vector.broadcast %cst_18 : f32 to vector<8x1xf32>
      %c0_19 = arith.constant 0 : index
      %c0_20 = arith.constant 0 : index
      %22 = vector.load %arg8[%c0_19, %c0_20] : memref<8x1xf32, #tpu.memory_space<vmem>>, vector<8x1xf32>
      tpu.vector_store %arg8[%c0_19, %c0_20], %21 {strides = array<i32>} : memref<8x1xf32, #tpu.memory_space<vmem>>, vector<8x1xf32>,
    } else {
    }
    %c0 = arith.constant 0 : index
    %c0_1 = arith.constant 0 : index
    %3 = vector.load %arg2[%c0, %c0_1] : memref<8x128xf32, #tpu.memory_space<vmem>>, vector<8x128xf32>
    %c0_2 = arith.constant 0 : index
    %c0_3 = arith.constant 0 : index
    %4 = vector.load %arg7[%c0_2, %c0_3] : memref<8x128xf32, #tpu.memory_space<vmem>>, vector<8x128xf32>
    %5 = arith.truncf %3 : vector<8x128xf32> to vector<8x128xbf16>
    %c0_4 = arith.constant 0 : index
    %c0_5 = arith.constant 0 : index
    %6 = vector.load %arg3[%c0_4, %c0_5] : memref<128x128xbf16, #tpu.memory_space<vmem>>, vector<128x128xbf16>
    %cst = arith.constant dense<0.000000e+00> : vector<8x128xf32>
    %7 = tpu.matmul %5, %6, %cst {dimension_numbers = #tpu.dot_dimension_numbers<[1], [0], [0], [1], [0, 0, 1, 1], [], []>} : vector<8x128xbf16>, vector<128x128xbf16>, vector<8x128xf32> -> vector<8x128xf32>
    %8 = arith.addf %4, %7 : vector<8x128xf32>
    %c0_6 = arith.constant 0 : index
    %c0_7 = arith.constant 0 : index
    %9 = vector.load %arg7[%c0_6, %c0_7] : memref<8x128xf32, #tpu.memory_space<vmem>>, vector<8x128xf32>
    tpu.vector_store %arg7[%c0_6, %c0_7], %8 {strides = array<i32>} : memref<8x128xf32, #tpu.memory_space<vmem>>, vector<8x128xf32>,
    %c0_8 = arith.constant 0 : index
    %c0_9 = arith.constant 0 : index
    %10 = vector.load %arg8[%c0_8, %c0_9] : memref<8x1xf32, #tpu.memory_space<vmem>>, vector<8x1xf32>
    %11 = arith.mulf %3, %3 : vector<8x128xf32>
    %cst_10 = arith.constant dense<0.000000e+00> : vector<8xf32>
    %12 = vector.multi_reduction <add>, %11, %cst_10 [1] : vector<8x128xf32> to vector<8xf32>
    %13 = vector.shape_cast %12 : vector<8xf32> to vector<8x1xf32>
    %14 = arith.addf %10, %13 : vector<8x1xf32>
    %c0_11 = arith.constant 0 : index
    %c0_12 = arith.constant 0 : index
    %15 = vector.load %arg8[%c0_11, %c0_12] : memref<8x1xf32, #tpu.memory_space<vmem>>, vector<8x1xf32>
    tpu.vector_store %arg8[%c0_11, %c0_12], %14 {strides = array<i32>} : memref<8x1xf32, #tpu.memory_space<vmem>>, vector<8x1xf32>,
    %c0_i32_13 = arith.constant 0 : i32
    %16 = arith.cmpi eq, %arg1, %c0_i32_13 : i32
    %17 = arith.extui %16 : i1 to i32
    %c0_i32_14 = arith.constant 0 : i32
    %18 = arith.cmpi ne, %17, %c0_i32_14 : i32
    scf.if %18 {
      %c0_15 = arith.constant 0 : index
      %c0_16 = arith.constant 0 : index
      %19 = vector.load %arg7[%c0_15, %c0_16] : memref<8x128xf32, #tpu.memory_space<vmem>>, vector<8x128xf32>
      %c0_17 = arith.constant 0 : index
      %c0_18 = arith.constant 0 : index
      %20 = vector.load %arg8[%c0_17, %c0_18] : memref<8x1xf32, #tpu.memory_space<vmem>>, vector<8x1xf32>
      %21 = arith.mulf %19, %19 : vector<8x128xf32>
      %cst_19 = arith.constant dense<0.000000e+00> : vector<8xf32>
      %22 = vector.multi_reduction <add>, %21, %cst_19 [1] : vector<8x128xf32> to vector<8xf32>
      %23 = vector.shape_cast %22 : vector<8xf32> to vector<8x1xf32>
      %cst_20 = arith.constant 1.000000e-30 : f32
      %24 = vector.broadcast %cst_20 : f32 to vector<8x1xf32>
      %25 = arith.maximumf %20, %24 : vector<8x1xf32>
      %26 = math.rsqrt %25 : vector<8x1xf32>
      %cst_21 = arith.constant 1.000000e-30 : f32
      %27 = vector.broadcast %cst_21 : f32 to vector<8x1xf32>
      %28 = arith.maximumf %23, %27 : vector<8x1xf32>
      %29 = math.rsqrt %28 : vector<8x1xf32>
      %30 = arith.mulf %20, %26 : vector<8x1xf32>
      %31 = arith.mulf %23, %29 : vector<8x1xf32>
      %cst_22 = arith.constant 1.000000e+00 : f32
      %32 = vector.broadcast %cst_22 : f32 to vector<8x1xf32>
      %33 = arith.mulf %32, %30 : vector<8x1xf32>
      %cst_23 = arith.constant -0.99999988 : f32
      %cst_24 = arith.constant 0.99999988 : f32
      %34 = vector.broadcast %cst_23 : f32 to vector<8x1xf32>
      %35 = arith.maximumf %34, %33 : vector<8x1xf32>
      %36 = vector.broadcast %cst_24 : f32 to vector<8x1xf32>
      %37 = arith.minimumf %36, %35 : vector<8x1xf32>
      %cst_25 = arith.constant 1.000000e+00 : f32
      %38 = vector.broadcast %cst_25 : f32 to vector<8x1xf32>
      %39 = arith.addf %38, %37 : vector<8x1xf32>
      %cst_26 = arith.constant 1.000000e+00 : f32
      %40 = vector.broadcast %cst_26 : f32 to vector<8x1xf32>
      %41 = arith.subf %40, %37 : vector<8x1xf32>
      %42 = arith.divf %39, %41 : vector<8x1xf32>
      %43 = math.log %42 : vector<8x1xf32>
      %cst_27 = arith.constant 5.000000e-01 : f32
      %44 = vector.broadcast %cst_27 : f32 to vector<8x1xf32>
      %45 = arith.mulf %44, %43 : vector<8x1xf32>
      %46 = arith.mulf %31, %26 : vector<8x1xf32>
      %47 = arith.mulf %46, %45 : vector<8x1xf32>
      %48 = math.tanh %47 : vector<8x1xf32>
      %cst_28 = arith.constant 0.995999991 : f32
      %49 = vector.broadcast %cst_28 : f32 to vector<8x1xf32>
      %50 = arith.minimumf %48, %49 : vector<8x1xf32>
      %cst_29 = arith.constant 0.000000e+00 : f32
      %51 = vector.broadcast %cst_29 : f32 to vector<8x1xf32>
      %52 = arith.cmpf oeq, %23, %51 : vector<8x1xf32>
      %cst_30 = arith.constant 0.000000e+00 : f32
      %53 = vector.broadcast %cst_30 : f32 to vector<8x1xf32>
      %54 = arith.select %52, %53, %50 : vector<8x1xi1>, vector<8x1xf32>
      %cst_31 = arith.constant 1.000000e+00 : f32
      %55 = vector.broadcast %cst_31 : f32 to vector<8x1xf32>
      %56 = arith.mulf %29, %55 : vector<8x1xf32>
      %57 = arith.mulf %54, %56 : vector<8x1xf32>
      %58 = vector.broadcast %57 : vector<8x1xf32> to vector<8x128xf32>
      %59 = arith.mulf %19, %58 : vector<8x128xf32>
      %c0_32 = arith.constant 0 : index
      %c0_33 = arith.constant 0 : index
      %60 = vector.load %arg4[%c0_32, %c0_33] : memref<1x128xf32, #tpu.memory_space<vmem>>, vector<1x128xf32>
      %c0_34 = arith.constant 0 : index
      %61 = memref.load %arg5[%c0_34] : memref<1xf32, #tpu.memory_space<smem>>
      %62 = arith.mulf %54, %54 : vector<8x1xf32>
      %cst_35 = arith.constant 1.000000e+00 : f32
      %63 = vector.broadcast %cst_35 : f32 to vector<8x1xf32>
      %64 = arith.mulf %62, %63 : vector<8x1xf32>
      %65 = vector.broadcast %60 : vector<1x128xf32> to vector<8x128xf32>
      %66 = arith.mulf %59, %65 : vector<8x128xf32>
      %cst_36 = arith.constant dense<0.000000e+00> : vector<8xf32>
      %67 = vector.multi_reduction <add>, %66, %cst_36 [1] : vector<8x128xf32> to vector<8xf32>
      %68 = vector.shape_cast %67 : vector<8xf32> to vector<8x1xf32>
      %cst_37 = arith.constant 2.000000e+00 : f32
      %69 = vector.broadcast %cst_37 : f32 to vector<8x1xf32>
      %70 = arith.mulf %69, %68 : vector<8x1xf32>
      %cst_38 = arith.constant 1.000000e+00 : f32
      %71 = vector.broadcast %cst_38 : f32 to vector<8x1xf32>
      %72 = arith.addf %71, %70 : vector<8x1xf32>
      %cst_39 = arith.constant 1.000000e+00 : f32
      %73 = arith.mulf %cst_39, %61 : f32
      %74 = vector.broadcast %73 : f32 to vector<8x1xf32>
      %75 = arith.addf %72, %74 : vector<8x1xf32>
      %76 = vector.broadcast %75 : vector<8x1xf32> to vector<8x128xf32>
      %77 = arith.mulf %76, %59 : vector<8x128xf32>
      %cst_40 = arith.constant 1.000000e+00 : f32
      %78 = vector.broadcast %cst_40 : f32 to vector<8x1xf32>
      %79 = arith.mulf %78, %64 : vector<8x1xf32>
      %cst_41 = arith.constant 1.000000e+00 : f32
      %80 = vector.broadcast %cst_41 : f32 to vector<8x1xf32>
      %81 = arith.subf %80, %79 : vector<8x1xf32>
      %82 = vector.broadcast %81 : vector<8x1xf32> to vector<8x128xf32>
      %83 = vector.broadcast %60 : vector<1x128xf32> to vector<8x128xf32>
      %84 = arith.mulf %82, %83 : vector<8x128xf32>
      %85 = arith.addf %77, %84 : vector<8x128xf32>
      %cst_42 = arith.constant 1.000000e+00 : f32
      %86 = vector.broadcast %cst_42 : f32 to vector<8x1xf32>
      %87 = arith.addf %86, %70 : vector<8x1xf32>
      %88 = vector.broadcast %61 : f32 to vector<8x1xf32>
      %89 = arith.mulf %64, %88 : vector<8x1xf32>
      %cst_43 = arith.constant 1.000000e+00 : f32
      %90 = vector.broadcast %cst_43 : f32 to vector<8x1xf32>
      %91 = arith.mulf %90, %89 : vector<8x1xf32>
      %92 = arith.addf %87, %91 : vector<8x1xf32>
      %cst_44 = arith.constant 1.000000e-15 : f32
      %93 = vector.broadcast %cst_44 : f32 to vector<8x1xf32>
      %94 = arith.maximumf %92, %93 : vector<8x1xf32>
      %95 = tpu.reciprocal %94 {approx = true} : vector<8x1xf32> -> vector<8x1xf32>
      %96 = vector.broadcast %95 : vector<8x1xf32> to vector<8x128xf32>
      %97 = arith.mulf %85, %96 : vector<8x128xf32>
      %98 = arith.mulf %97, %97 : vector<8x128xf32>
      %cst_45 = arith.constant dense<0.000000e+00> : vector<8xf32>
      %99 = vector.multi_reduction <add>, %98, %cst_45 [1] : vector<8x128xf32> to vector<8xf32>
      %100 = vector.shape_cast %99 : vector<8xf32> to vector<8x1xf32>
      %cst_46 = arith.constant 1.000000e-30 : f32
      %101 = vector.broadcast %cst_46 : f32 to vector<8x1xf32>
      %102 = arith.maximumf %100, %101 : vector<8x1xf32>
      %103 = math.rsqrt %102 : vector<8x1xf32>
      %cst_47 = arith.constant 9.920160e-01 : f32
      %104 = vector.broadcast %cst_47 : f32 to vector<8x1xf32>
      %105 = arith.cmpf ogt, %100, %104 : vector<8x1xf32>
      %cst_48 = arith.constant 0.995999991 : f32
      %106 = vector.broadcast %cst_48 : f32 to vector<8x1xf32>
      %107 = arith.mulf %106, %103 : vector<8x1xf32>
      %cst_49 = arith.constant 1.000000e+00 : f32
      %108 = vector.broadcast %cst_49 : f32 to vector<8x1xf32>
      %109 = arith.select %105, %107, %108 : vector<8x1xi1>, vector<8x1xf32>
      %110 = vector.broadcast %109 : vector<8x1xf32> to vector<8x128xf32>
      %111 = arith.mulf %97, %110 : vector<8x128xf32>
      %c0_50 = arith.constant 0 : index
      %c0_51 = arith.constant 0 : index
      %112 = vector.load %arg6[%c0_50, %c0_51] : memref<8x128xf32, #tpu.memory_space<vmem>>, vector<8x128xf32>
      tpu.vector_store %arg6[%c0_50, %c0_51], %111 {strides = array<i32>} : memref<8x128xf32, #tpu.memory_space<vmem>>, vector<8x128xf32>,
    } else {
    }
    return
  }
  func.func @transform_0(%arg0: i32, %arg1: i32) -> (i32, i32) {
    %c0_i32 = arith.constant 0 : i32
    return %arg0, %arg1 : i32, i32
  }
  func.func @transform_1(%arg0: i32, %arg1: i32) -> (i32, i32) {
    %c0_i32 = arith.constant 0 : i32
    %c0_i32_0 = arith.constant 0 : i32
    return %arg1, %c0_i32 : i32, i32
  }
  func.func @transform_2(%arg0: i32, %arg1: i32) -> (i32, i32) {
    %c0_i32 = arith.constant 0 : i32
    %c0_i32_0 = arith.constant 0 : i32
    %c0_i32_1 = arith.constant 0 : i32
    return %c0_i32, %c0_i32_0 : i32, i32
  }
  func.func @transform_3(%arg0: i32, %arg1: i32) -> i32 {
    %c0_i32 = arith.constant 0 : i32
    %c0_i32_0 = arith.constant 0 : i32
    return %c0_i32 : i32
  }
  func.func @transform_4(%arg0: i32, %arg1: i32) -> (i32, i32) {
    %c0_i32 = arith.constant 0 : i32
    %c0_i32_0 = arith.constant 0 : i32
    return %arg0, %c0_i32 : i32, i32
  }
}

module attributes {stable_mosaic.version = 11 : i64} {
  func.func @hyp_linear_kernel(%arg0: i32, %arg1: i32, %arg2: memref<8x128xf32, #tpu.memory_space<vmem>>, %arg3: memref<128x128xbf16, #tpu.memory_space<vmem>>, %arg4: memref<1x128xf32, #tpu.memory_space<vmem>>, %arg5: memref<1xf32, #tpu.memory_space<smem>>, %arg6: memref<8x128xf32, #tpu.memory_space<vmem>>, %arg7: memref<8x128xf32, #tpu.memory_space<vmem>>, %arg8: memref<8x1xf32, #tpu.memory_space<vmem>>) attributes {dimension_semantics = [#tpu.dimension_semantics<parallel>, #tpu.dimension_semantics<arbitrary>], iteration_bounds = array<i64: 1, 1>, scalar_prefetch = 0 : i64, scratch_operands = 2 : i64, tpu.core_type = #tpu.core_type<tc>, window_params = [{transform_indices = @transform_0, window_bounds = array<i64: 8, 128>}, {transform_indices = @transform_1, window_bounds = array<i64: 128, 128>}, {pipeline_mode = #tpu.pipeline_mode<synchronous>, transform_indices = @transform_2, window_bounds = array<i64: 1, 128>}, {transform_indices = @transform_3, window_bounds = array<i64: 1>}, {transform_indices = @transform_4, window_bounds = array<i64: 8, 128>}]} {
    %c0_i32 = arith.constant 0 : i32
    %0 = arith.cmpi eq, %arg1, %c0_i32 : i32
    %1 = arith.extui %0 : i1 to i32
    %c0_i32_0 = arith.constant 0 : i32
    %2 = arith.cmpi ne, %1, %c0_i32_0 : i32
    scf.if %2 {
      %cst_15 = arith.constant 0.000000e+00 : f32
      %19 = vector.broadcast %cst_15 : f32 to vector<8x128xf32>
      %c0_16 = arith.constant 0 : index
      %c0_17 = arith.constant 0 : index
      %20 = vector.load %arg7[%c0_16, %c0_17] : memref<8x128xf32, #tpu.memory_space<vmem>>, vector<8x128xf32>
      tpu.vector_store %arg7[%c0_16, %c0_17], %19 {strides = array<i32>} : memref<8x128xf32, #tpu.memory_space<vmem>>, vector<8x128xf32>,
      %cst_18 = arith.constant 0.000000e+00 : f32
      %21 = vector.broadcast %cst_18 : f32 to vector<8x1xf32>
      %c0_19 = arith.constant 0 : index
      %c0_20 = arith.constant 0 : index
      %22 = vector.load %arg8[%c0_19, %c0_20] : memref<8x1xf32, #tpu.memory_space<vmem>>, vector<8x1xf32>
      tpu.vector_store %arg8[%c0_19, %c0_20], %21 {strides = array<i32>} : memref<8x1xf32, #tpu.memory_space<vmem>>, vector<8x1xf32>,
    } else {
    }
    %c0 = arith.constant 0 : index
    %c0_1 = arith.constant 0 : index
    %3 = vector.load %arg2[%c0, %c0_1] : memref<8x128xf32, #tpu.memory_space<vmem>>, vector<8x128xf32>
    %c0_2 = arith.constant 0 : index
    %c0_3 = arith.constant 0 : index
    %4 = vector.load %arg7[%c0_2, %c0_3] : memref<8x128xf32, #tpu.memory_space<vmem>>, vector<8x128xf32>
    %5 = arith.truncf %3 : vector<8x128xf32> to vector<8x128xbf16>
    %c0_4 = arith.constant 0 : index
    %c0_5 = arith.constant 0 : index
    %6 = vector.load %arg3[%c0_4, %c0_5] : memref<128x128xbf16, #tpu.memory_space<vmem>>, vector<128x128xbf16>
    %cst = arith.constant dense<0.000000e+00> : vector<8x128xf32>
    %7 = tpu.matmul %5, %6, %cst {dimension_numbers = #tpu.dot_dimension_numbers<[1], [0], [0], [1], [0, 0, 1, 1], [], []>} : vector<8x128xbf16>, vector<128x128xbf16>, vector<8x128xf32> -> vector<8x128xf32>
    %8 = arith.addf %4, %7 : vector<8x128xf32>
    %c0_6 = arith.constant 0 : index
    %c0_7 = arith.constant 0 : index
    %9 = vector.load %arg7[%c0_6, %c0_7] : memref<8x128xf32, #tpu.memory_space<vmem>>, vector<8x128xf32>
    tpu.vector_store %arg7[%c0_6, %c0_7], %8 {strides = array<i32>} : memref<8x128xf32, #tpu.memory_space<vmem>>, vector<8x128xf32>,
    %c0_8 = arith.constant 0 : index
    %c0_9 = arith.constant 0 : index
    %10 = vector.load %arg8[%c0_8, %c0_9] : memref<8x1xf32, #tpu.memory_space<vmem>>, vector<8x1xf32>
    %11 = arith.mulf %3, %3 : vector<8x128xf32>
    %cst_10 = arith.constant dense<0.000000e+00> : vector<8xf32>
    %12 = vector.multi_reduction <add>, %11, %cst_10 [1] : vector<8x128xf32> to vector<8xf32>
    %13 = vector.shape_cast %12 : vector<8xf32> to vector<8x1xf32>
    %14 = arith.addf %10, %13 : vector<8x1xf32>
    %c0_11 = arith.constant 0 : index
    %c0_12 = arith.constant 0 : index
    %15 = vector.load %arg8[%c0_11, %c0_12] : memref<8x1xf32, #tpu.memory_space<vmem>>, vector<8x1xf32>
    tpu.vector_store %arg8[%c0_11, %c0_12], %14 {strides = array<i32>} : memref<8x1xf32, #tpu.memory_space<vmem>>, vector<8x1xf32>,
    %c0_i32_13 = arith.constant 0 : i32
    %16 = arith.cmpi eq, %arg1, %c0_i32_13 : i32
    %17 = arith.extui %16 : i1 to i32
    %c0_i32_14 = arith.constant 0 : i32
    %18 = arith.cmpi ne, %17, %c0_i32_14 : i32
    scf.if %18 {
      %c0_15 = arith.constant 0 : index
      %c0_16 = arith.constant 0 : index
      %19 = vector.load %arg7[%c0_15, %c0_16] : memref<8x128xf32, #tpu.memory_space<vmem>>, vector<8x128xf32>
      %c0_17 = arith.constant 0 : index
      %c0_18 = arith.constant 0 : index
      %20 = vector.load %arg8[%c0_17, %c0_18] : memref<8x1xf32, #tpu.memory_space<vmem>>, vector<8x1xf32>
      %21 = arith.mulf %19, %19 : vector<8x128xf32>
      %cst_19 = arith.constant dense<0.000000e+00> : vector<8xf32>
      %22 = vector.multi_reduction <add>, %21, %cst_19 [1] : vector<8x128xf32> to vector<8xf32>
      %23 = vector.shape_cast %22 : vector<8xf32> to vector<8x1xf32>
      %cst_20 = arith.constant 1.000000e-30 : f32
      %24 = vector.broadcast %cst_20 : f32 to vector<8x1xf32>
      %25 = arith.maximumf %20, %24 : vector<8x1xf32>
      %26 = math.rsqrt %25 : vector<8x1xf32>
      %cst_21 = arith.constant 1.000000e-30 : f32
      %27 = vector.broadcast %cst_21 : f32 to vector<8x1xf32>
      %28 = arith.maximumf %23, %27 : vector<8x1xf32>
      %29 = math.rsqrt %28 : vector<8x1xf32>
      %30 = arith.mulf %20, %26 : vector<8x1xf32>
      %31 = arith.mulf %23, %29 : vector<8x1xf32>
      %cst_22 = arith.constant 1.000000e+00 : f32
      %32 = vector.broadcast %cst_22 : f32 to vector<8x1xf32>
      %33 = arith.mulf %32, %30 : vector<8x1xf32>
      %cst_23 = arith.constant -0.99999988 : f32
      %cst_24 = arith.constant 0.99999988 : f32
      %34 = vector.broadcast %cst_23 : f32 to vector<8x1xf32>
      %35 = arith.maximumf %34, %33 : vector<8x1xf32>
      %36 = vector.broadcast %cst_24 : f32 to vector<8x1xf32>
      %37 = arith.minimumf %36, %35 : vector<8x1xf32>
      %cst_25 = arith.constant 1.000000e+00 : f32
      %38 = vector.broadcast %cst_25 : f32 to vector<8x1xf32>
      %39 = arith.addf %38, %37 : vector<8x1xf32>
      %cst_26 = arith.constant 1.000000e+00 : f32
      %40 = vector.broadcast %cst_26 : f32 to vector<8x1xf32>
      %41 = arith.subf %40, %37 : vector<8x1xf32>
      %42 = arith.divf %39, %41 : vector<8x1xf32>
      %43 = math.log %42 : vector<8x1xf32>
      %cst_27 = arith.constant 5.000000e-01 : f32
      %44 = vector.broadcast %cst_27 : f32 to vector<8x1xf32>
      %45 = arith.mulf %44, %43 : vector<8x1xf32>
      %46 = arith.mulf %31, %26 : vector<8x1xf32>
      %47 = arith.mulf %46, %45 : vector<8x1xf32>
      %48 = math.tanh %47 : vector<8x1xf32>
      %cst_28 = arith.constant 0.995999991 : f32
      %49 = vector.broadcast %cst_28 : f32 to vector<8x1xf32>
      %50 = arith.minimumf %48, %49 : vector<8x1xf32>
      %cst_29 = arith.constant 0.000000e+00 : f32
      %51 = vector.broadcast %cst_29 : f32 to vector<8x1xf32>
      %52 = arith.cmpf oeq, %23, %51 : vector<8x1xf32>
      %cst_30 = arith.constant 0.000000e+00 : f32
      %53 = vector.broadcast %cst_30 : f32 to vector<8x1xf32>
      %54 = arith.select %52, %53, %50 : vector<8x1xi1>, vector<8x1xf32>
      %cst_31 = arith.constant 1.000000e+00 : f32
      %55 = vector.broadcast %cst_31 : f32 to vector<8x1xf32>
      %56 = arith.mulf %29, %55 : vector<8x1xf32>
      %57 = arith.mulf %54, %56 : vector<8x1xf32>
      %58 = vector.broadcast %57 : vector<8x1xf32> to vector<8x128xf32>
      %59 = arith.mulf %19, %58 : vector<8x128xf32>
      %c0_32 = arith.constant 0 : index
      %c0_33 = arith.constant 0 : index
      %60 = vector.load %arg4[%c0_32, %c0_33] : memref<1x128xf32, #tpu.memory_space<vmem>>, vector<1x128xf32>
      %c0_34 = arith.constant 0 : index
      %61 = memref.load %arg5[%c0_34] : memref<1xf32, #tpu.memory_space<smem>>
      %62 = arith.mulf %54, %54 : vector<8x1xf32>
      %cst_35 = arith.constant 1.000000e+00 : f32
      %63 = vector.broadcast %cst_35 : f32 to vector<8x1xf32>
      %64 = arith.mulf %62, %63 : vector<8x1xf32>
      %65 = vector.broadcast %60 : vector<1x128xf32> to vector<8x128xf32>
      %66 = arith.mulf %59, %65 : vector<8x128xf32>
      %cst_36 = arith.constant dense<0.000000e+00> : vector<8xf32>
      %67 = vector.multi_reduction <add>, %66, %cst_36 [1] : vector<8x128xf32> to vector<8xf32>
      %68 = vector.shape_cast %67 : vector<8xf32> to vector<8x1xf32>
      %cst_37 = arith.constant 2.000000e+00 : f32
      %69 = vector.broadcast %cst_37 : f32 to vector<8x1xf32>
      %70 = arith.mulf %69, %68 : vector<8x1xf32>
      %cst_38 = arith.constant 1.000000e+00 : f32
      %71 = vector.broadcast %cst_38 : f32 to vector<8x1xf32>
      %72 = arith.addf %71, %70 : vector<8x1xf32>
      %cst_39 = arith.constant 1.000000e+00 : f32
      %73 = arith.mulf %cst_39, %61 : f32
      %74 = vector.broadcast %73 : f32 to vector<8x1xf32>
      %75 = arith.addf %72, %74 : vector<8x1xf32>
      %76 = vector.broadcast %75 : vector<8x1xf32> to vector<8x128xf32>
      %77 = arith.mulf %76, %59 : vector<8x128xf32>
      %cst_40 = arith.constant 1.000000e+00 : f32
      %78 = vector.broadcast %cst_40 : f32 to vector<8x1xf32>
      %79 = arith.mulf %78, %64 : vector<8x1xf32>
      %cst_41 = arith.constant 1.000000e+00 : f32
      %80 = vector.broadcast %cst_41 : f32 to vector<8x1xf32>
      %81 = arith.subf %80, %79 : vector<8x1xf32>
      %82 = vector.broadcast %81 : vector<8x1xf32> to vector<8x128xf32>
      %83 = vector.broadcast %60 : vector<1x128xf32> to vector<8x128xf32>
      %84 = arith.mulf %82, %83 : vector<8x128xf32>
      %85 = arith.addf %77, %84 : vector<8x128xf32>
      %cst_42 = arith.constant 1.000000e+00 : f32
      %86 = vector.broadcast %cst_42 : f32 to vector<8x1xf32>
      %87 = arith.addf %86, %70 : vector<8x1xf32>
      %88 = vector.broadcast %61 : f32 to vector<8x1xf32>
      %89 = arith.mulf %64, %88 : vector<8x1xf32>
      %cst_43 = arith.constant 1.000000e+00 : f32
      %90 = vector.broadcast %cst_43 : f32 to vector<8x1xf32>
      %91 = arith.mulf %90, %89 : vector<8x1xf32>
      %92 = arith.addf %87, %91 : vector<8x1xf32>
      %cst_44 = arith.constant 1.000000e-15 : f32
      %93 = vector.broadcast %cst_44 : f32 to vector<8x1xf32>
      %94 = arith.maximumf %92, %93 : vector<8x1xf32>
      %95 = tpu.reciprocal %94 {approx = true} : vector<8x1xf32> -> vector<8x1xf32>
      %96 = vector.broadcast %95 : vector<8x1xf32> to vector<8x128xf32>
      %97 = arith.mulf %85, %96 : vector<8x128xf32>
      %98 = arith.mulf %97, %97 : vector<8x128xf32>
      %cst_45 = arith.constant dense<0.000000e+00> : vector<8xf32>
      %99 = vector.multi_reduction <add>, %98, %cst_45 [1] : vector<8x128xf32> to vector<8xf32>
      %100 = vector.shape_cast %99 : vector<8xf32> to vector<8x1xf32>
      %cst_46 = arith.constant 1.000000e-30 : f32
      %101 = vector.broadcast %cst_46 : f32 to vector<8x1xf32>
      %102 = arith.maximumf %100, %101 : vector<8x1xf32>
      %103 = math.rsqrt %102 : vector<8x1xf32>
      %cst_47 = arith.constant 9.920160e-01 : f32
      %104 = vector.broadcast %cst_47 : f32 to vector<8x1xf32>
      %105 = arith.cmpf ogt, %100, %104 : vector<8x1xf32>
      %cst_48 = arith.constant 0.995999991 : f32
      %106 = vector.broadcast %cst_48 : f32 to vector<8x1xf32>
      %107 = arith.mulf %106, %103 : vector<8x1xf32>
      %cst_49 = arith.constant 1.000000e+00 : f32
      %108 = vector.broadcast %cst_49 : f32 to vector<8x1xf32>
      %109 = arith.select %105, %107, %108 : vector<8x1xi1>, vector<8x1xf32>
      %110 = vector.broadcast %109 : vector<8x1xf32> to vector<8x128xf32>
      %111 = arith.mulf %97, %110 : vector<8x128xf32>
      %c0_50 = arith.constant 0 : index
      %c0_51 = arith.constant 0 : index
      %112 = vector.load %arg6[%c0_50, %c0_51] : memref<8x128xf32, #tpu.memory_space<vmem>>, vector<8x128xf32>
      tpu.vector_store %arg6[%c0_50, %c0_51], %111 {strides = array<i32>} : memref<8x128xf32, #tpu.memory_space<vmem>>, vector<8x128xf32>,
    } else {
    }
    return
  }
  func.func @transform_0(%arg0: i32, %arg1: i32) -> (i32, i32) {
    %c0_i32 = arith.constant 0 : i32
    return %arg0, %arg1 : i32, i32
  }
  func.func @transform_1(%arg0: i32, %arg1: i32) -> (i32, i32) {
    %c0_i32 = arith.constant 0 : i32
    %c0_i32_0 = arith.constant 0 : i32
    return %arg1, %c0_i32 : i32, i32
  }
  func.func @transform_2(%arg0: i32, %arg1: i32) -> (i32, i32) {
    %c0_i32 = arith.constant 0 : i32
    %c0_i32_0 = arith.constant 0 : i32
    %c0_i32_1 = arith.constant 0 : i32
    return %c0_i32, %c0_i32_0 : i32, i32
  }
  func.func @transform_3(%arg0: i32, %arg1: i32) -> i32 {
    %c0_i32 = arith.constant 0 : i32
    %c0_i32_0 = arith.constant 0 : i32
    return %c0_i32 : i32
  }
  func.func @transform_4(%arg0: i32, %arg1: i32) -> (i32, i32) {
    %c0_i32 = arith.constant 0 : i32
    %c0_i32_0 = arith.constant 0 : i32
    return %arg0, %c0_i32 : i32, i32
  }
}

</mosaic_0001>

<bundles_post_ra>
// kernel: tpu_custom_call.1
= control target key start
LH: loop header
LB: loop body
LE: loop exit
PB: predicated region body
PF: predicated region fallthrough
CT: control target
= control target key end

     0   :  { %10 = vsyncpa [#allocation6], 0  ;;  %s477_s0 = inlined_call_operand.hbm [shape: f32[8,128], index: 0, kind: input, shape index: {}]   ;;  %s478_s1 = inlined_call_operand.hbm [shape: bf16[128,128], index: 1, kind: input, shape index: {}]   ;;  %s479_s2 = inlined_call_operand.vmem [shape: f32[1,128], index: 2, kind: input, shape index: {}]   ;;  %s480_s3 = inlined_call_operand.<no memory space> [shape: f32[1], index: 3, kind: input, shape index: {}]   ;;  %s481_s4 = inlined_call_operand.hbm [shape: f32[8,128], index: 4, kind: output, shape index: {}]  }
   0x1   :  { %11 = vsyncpa [#allocation9], 0 }
   0x2   :  { %12 = vsyncpa [#allocation7], 0  ;;  %s18_s17 = sshll.u32 %s477_s0, 4  ;;  %s425_s18 = smov [#allocation5]   ;;  %s19_s17 = int_to_ptr.hbm [resolvable:$true] %s18_s17 }
   0x3   :  { %s20_s19 = sshll.u32 %s425_s18, 4  ;;  %s28_s22 = sshll.u32 %s478_s1, 4  ;;  %s21_s19 = int_to_ptr.vmem [resolvable:$true] %s20_s19  ;;  %s29_s22 = int_to_ptr.hbm [resolvable:$true] %s28_s22 }
   0x4   :  { %23 = dma.hbm_to_vmem [thread:$0]  %s19_s17, 128, %s21_s19, [#allocation6]  }
   0x5   :  { %s426_s23 = smov [#allocation8]   ;;  %s427_s25 = smov 64  }
   0x6   :  { %s30_s24 = sshll.u32 %s426_s23, 4  ;;  %s428_s26 = smov 4   ;;  %s31_s24 = int_to_ptr.vmem [resolvable:$true] %s30_s24 }
   0x7   :  { %36 = dma.hbm_to_vmem [thread:$0]  %s29_s22, 1024, %s31_s24, [#allocation9], %s427_s25, %s427_s25, %s428_s26  }
   0x8   :  { %419 = dma.done.wait [#allocation6], 128  }
   0x9   :  { %420 = vsyncadd [#allocation6], 4294967168 }
   0xa   :  { %421 = dma.done.wait [#allocation9], 1024  }
   0xb   :  { %422 = vsyncadd [#allocation9], 4294966272  ;;  %v321_v0 = vld [vmem:[#allocation8 + $0x38] sm:$0xff]  ;;  %v320_v1 = vld [vmem:[#allocation8 + $0x30] sm:$0xff]  ;;  %vm54_vm0 = vcmask 7168   ;;  %v429_v11 = vmov 0.0  }
   0xc   :  { %123 = vmatpush.bf16.msra.mxu0 %v321_v0  ;;  %v56_v2 = vld [vmem:[#allocation5] sm:$0xff]  ;;  %v319_v4 = vld [vmem:[#allocation8 + $0x28] sm:$0xff]  ;;  %v318_v5 = vld [vmem:[#allocation8 + $0x20] sm:$0xff]  ;;  %55 = vst.msk [vmem:[#allocation3] sm:$0xff] %vm54_vm0, %v429_v11  ;;  %v430_v30 = vmov 0   ;;  %s270_s5 = sshll.u32 %s481_s4, 4  ;;  %s271_s5 = int_to_ptr.hbm [resolvable:$true] %s270_s5 }
   0xd   :  { %v139_v3 = vmul.f32 %v56_v2, %v56_v2  ;;  %v317_v6 = vld [vmem:[#allocation8 + $0x18] sm:$0xff]  ;;  %v316_v7 = vld [vmem:[#allocation8 + $0x10] sm:$0xff]  ;;  %v315_v8 = vld [vmem:[#allocation8 + $0x8] sm:$0xff]  ;;  %v58_v10 = vpack.c.bf16 %v56_v2, %v56_v2  ;;  %329 = vset.pattern.permute.xlu1 %v430_v30  ;;  %330 = vset.pattern.permute.xlu2 %v430_v30 }
   0xe   :  { %v314_v9 = vld [vmem:[#allocation8] sm:$0xff]  ;;  %331 = vset.pattern.permute.xlu0 %v430_v30 }
   0xf   :  { %140 = vadd.xlane.f32.xlu0 %v139_v3 }
  0x10   :  { %124 = vmatpush.bf16.msra.mxu0 %v320_v1  ;;  %v332_v1 = vld [vmem:[%s479_s2] ss:$0 sm:$0xff]  ;;  %s431_s2 = smov [#allocation10]  }
  0x13   :  { %v138_v13 = vld [vmem:[#allocation3] sm:$0xff] }
  0x14   :  { %125 = vmatpush.bf16.msra.mxu0 %v319_v4  ;;  %v223_v4 = vstv %s480_s3  ;;  %s268_s3 = sshll.u32 %s431_s2, 4  ;;  %s269_s3 = int_to_ptr.vmem [resolvable:$true] %s268_s3 }
  0x18   :  { %126 = vmatpush.bf16.msra.mxu0 %v318_v5 }
  0x1c   :  { %127 = vmatpush.bf16.msra.mxu0 %v317_v6 }
  0x20   :  { %128 = vmatpush.bf16.msra.mxu0 %v316_v7 }
  0x24   :  { %129 = vmatpush.bf16.msra.mxu0 %v315_v8 }
  0x28   :  { %130 = vmatpush.bf16.msra.mxu0 %v314_v9 }
  0x2b   :  { %131 = vmatmul.bf16.vlgmr.msra.gmra.mxu0 %v58_v10 }
  0x82   :  { %v141_v12 = vpop.xlane.xlu0 %140 }
  0x83   :  { %v142_v14 = vadd.f32 %v141_v12, %v138_v13 }
  0x85   :  { %144 = vst.msk [vmem:[#allocation3] sm:$0xff] %vm54_vm0, %v142_v14 }
  0x8c   :  { %v149_v18 = vld [vmem:[#allocation3] sm:$0xff] }
  0x8d   :  { %v153_v19 = vmax.f32 %v149_v18, 1e-30 }
  0x8f   :  { %333 = vrsqrt.f32 %v153_v19  ;;  %vm160_vm1 = vweird.f32 %v153_v19 }
  0x95   :  { %v334_v20 = vpop.eup %333 }
  0x96   :  { %v155_v21 = vmul.f32 %v334_v20, %v153_v19  ;;  %vm161_vm2 = vweird.f32 %v334_v20 }
  0x97   :  { %vm162_vm3 = vmor %vm160_vm1, %vm161_vm2 }
  0x98   :  { %v156_v22 = vmul.f32 %v334_v20, %v155_v21 }
  0x9a   :  { %v157_v23 = vmul.f32 0.5, %v156_v22 }
  0x9c   :  { %v158_v24 = vsub.f32 1.5, %v157_v23 }
  0x9e   :  { %v159_v25 = vmul.f32 %v334_v20, %v158_v24 }
  0xa0   :  { %v163_v26 = vsel %vm162_vm3, %v334_v20, %v159_v25 }
  0xa1   :  { %v175_v27 = vmul.f32 %v163_v26, %v149_v18 }
  0xa3   :  { %v313_v28 = vclamps-f32 %v175_v27, 0.9999999 }
  0xa5   :  { %v180_v29 = vsub.f32 1.0, %v313_v28  ;;  %v179_v42 = vadd.f32 1.0, %v313_v28 }
  0xa7   :  { %335 = vrcp.f32 %v180_v29  ;;  %vm186_vm4 = vweird.f32 %v180_v29  ;;  %v192_v35 = vand.u32 2147483648, %v180_v29  ;;  %v190_v37 = vand.u32 2147483647, %v180_v29 }
  0xa8   :  { %v463_v15 = vpop.f32.mrf.mxu0 }
  0xa9   :  { %v150_v16 = vmul.f32 %v463_v15, %v463_v15  ;;  %v193_v38 = vor.u32 1.1754944e-38, %v192_v35  ;;  %vm191_vm7 = vcmp.eq.f32.partialorder %v190_v37, 8.507059e+37 }
  0xab   :  { %151 = vadd.xlane.f32.xlu0 %v150_v16 }
  0xad   :  { %v336_v31 = vpop.eup %335 }
  0xae   :  { %v182_v32 = vmul.f32 %v336_v31, %v180_v29  ;;  %vm187_vm5 = vweird.f32 %v336_v31 }
  0xaf   :  { %vm188_vm6 = vmor %vm186_vm4, %vm187_vm5 }
  0xb0   :  { %v134_v17 = vpop.f32.mrf.mxu0  ;;  %v183_v33 = vsub.f32 1.0, %v182_v32 }
  0xb2   :  { %v184_v34 = vmul.f32 %v336_v31, %v183_v33 }
  0xb4   :  { %v185_v36 = vadd.f32 %v336_v31, %v184_v34 }
  0xb6   :  { %v189_v40 = vsel %vm188_vm6, %v336_v31, %v185_v36 }
  0xb7   :  { %v194_v43 = vsel %vm191_vm7, %v193_v38, %v189_v40 }
  0xb8   :  { %v195_v44 = vmul.f32 %v194_v43, %v179_v42 }
 0x11e   :  { %v152_v39 = vpop.xlane.xlu0 %151 }
 0x11f   :  { %v164_v41 = vmax.f32 %v152_v39, 1e-30  ;;  %vm203_vm11 = vcmp.eq.f32.partialorder %v152_v39, 0.0 }
 0x121   :  { %337 = vrsqrt.f32 %v164_v41  ;;  %vm171_vm9 = vweird.f32 %v164_v41 }
 0x122   :  { %339 = vlog2.f32 %v195_v44 }
 0x127   :  { %v338_v45 = vpop.eup %337 }
 0x128   :  { %v166_v46 = vmul.f32 %v338_v45, %v164_v41  ;;  %v340_v49 = vpop.eup %339  ;;  %vm172_vm8 = vweird.f32 %v338_v45 }
 0x129   :  { %vm173_vm10 = vmor %vm171_vm9, %vm172_vm8  ;;  %v197_v52 = vmul.f32 0.6931472, %v340_v49 }
 0x12a   :  { %v167_v47 = vmul.f32 %v338_v45, %v166_v46 }
 0x12b   :  { %v198_v55 = vmul.f32 0.5, %v197_v52 }
 0x12c   :  { %v168_v48 = vmul.f32 0.5, %v167_v47 }
 0x12e   :  { %v169_v50 = vsub.f32 1.5, %v168_v48 }
 0x130   :  { %v170_v51 = vmul.f32 %v338_v45, %v169_v50 }
 0x132   :  { %v174_v53 = vsel %vm173_vm10, %v338_v45, %v170_v51 }
 0x133   :  { %v176_v54 = vmul.f32 %v174_v53, %v152_v39 }
 0x135   :  { %v199_v56 = vmul.f32 %v176_v54, %v163_v26 }
 0x137   :  { %v200_v57 = vmul.f32 %v199_v56, %v198_v55 }
 0x139   :  { %341 = vtanh.f32 %v200_v57 }
 0x13f   :  { %v342_v58 = vpop.eup %341 }
 0x140   :  { %v202_v59 = vmin.f32 %v342_v58, 0.996 }
 0x142   :  { %v204_v60 = vsel %vm203_vm11, 0.0, %v202_v59 }
 0x143   :  { %v205_v61 = vmul.f32 %v204_v60, %v174_v53  ;;  %v214_v62 = vmul.f32 %v204_v60, %v204_v60 }
 0x145   :  { %208 = vperm.xlu1 %329, %v205_v61   ;;  %v226_v63 = vsub.f32 1.0, %v214_v62  ;;  %v234_v7 = vmul.f32 %v223_v4, %v214_v62 }
 0x147   :  { %229 = vperm.xlu2 %330, %v226_v63  }
 0x1a1   :  { %v230_v9 = vpop.permute.xlu2 %229 }
 0x1a2   :  { %v232_v12 = vmul.f32 %v332_v1, %v230_v9 }
 0x1b7   :  { %v209_v0 = vpop.permute.xlu1 %208 }
 0x1b8   :  { %v211_v2 = vmul.f32 %v209_v0, %v463_v15 }
 0x1ba   :  { %v218_v3 = vmul.f32 %v332_v1, %v211_v2 }
 0x1bc   :  { %219 = vadd.xlane.f32.xlu1 %v218_v3 }
 0x22f   :  { %v220_v5 = vpop.xlane.xlu1 %219 }
 0x230   :  { %v221_v6 = vmul.f32 2.0, %v220_v5 }
 0x232   :  { %v222_v8 = vadd.f32 1.0, %v221_v6 }
 0x234   :  { %v224_v10 = vadd.f32 %v223_v4, %v222_v8  ;;  %v235_v11 = vadd.f32 %v234_v7, %v222_v8 }
 0x236   :  { %v225_v13 = vmul.f32 %v224_v10, %v211_v2  ;;  %v236_v14 = vmax.f32 %v235_v11, 1e-15 }
 0x238   :  { %343 = vrcp.f32 %v236_v14  ;;  %v233_v16 = vadd.f32 %v232_v12, %v225_v13 }
 0x23e   :  { %v344_v17 = vpop.eup %343 }
 0x23f   :  { %240 = vperm.xlu2 %330, %v344_v17  }
 0x299   :  { %v241_v15 = vpop.permute.xlu2 %240 }
 0x29a   :  { %v243_v18 = vmul.f32 %v241_v15, %v233_v16 }
 0x29c   :  { %v244_v19 = vmul.f32 %v243_v18, %v243_v18 }
 0x29e   :  { %245 = vadd.xlane.f32.xlu0 %v244_v19 }
 0x311   :  { %v246_v20 = vpop.xlane.xlu0 %245 }
 0x312   :  { %v247_v21 = vmax.f32 %v246_v20, 1e-30  ;;  %vm258_vm15 = vcmp.gt.f32.partialorder %v246_v20, 0.992016 }
 0x314   :  { %345 = vrsqrt.f32 %v247_v21  ;;  %vm254_vm13 = vweird.f32 %v247_v21 }
 0x31a   :  { %v346_v22 = vpop.eup %345 }
 0x31b   :  { %v249_v23 = vmul.f32 %v346_v22, %v247_v21  ;;  %vm255_vm12 = vweird.f32 %v346_v22 }
 0x31c   :  { %vm256_vm14 = vmor %vm254_vm13, %vm255_vm12 }
 0x31d   :  { %v250_v24 = vmul.f32 %v346_v22, %v249_v23 }
 0x31f   :  { %v251_v25 = vmul.f32 0.5, %v250_v24 }
 0x321   :  { %v252_v26 = vsub.f32 1.5, %v251_v25 }
 0x323   :  { %v253_v27 = vmul.f32 %v346_v22, %v252_v26 }
 0x325   :  { %v257_v28 = vsel %vm256_vm14, %v346_v22, %v253_v27 }
 0x326   :  { %v259_v29 = vmul.f32 0.996, %v257_v28 }
 0x328   :  { %v260_v30 = vsel %vm258_vm15, %v259_v29, 1.0 }
 0x329   :  { %v261_v31 = vmul.f32 %v260_v30, %v243_v18 }
 0x32b   :  { %262 = vst [vmem:[#allocation10] sm:$0xff] %v261_v31 }
 0x32c   :  { %273 = dma.vmem_to_hbm [thread:$0]  %s269_s3, 128, %s271_s5, [#allocation7]  }
 0x32d   :  { %423 = dma.done.wait [#allocation7], 128  }
 0x32e   :  { %424 = vsyncadd [#allocation7], 4294967168 }
 0x32f   :  { %278 = vsyncpa [#allocation6], 1 }
 0x330   :  { %279 = vsyncpa [#allocation9], 1 }
 0x331   :  { %280 = vsyncpa [#allocation7], 1 }

// kernel: tpu_custom_call.1
= control target key start
LH: loop header
LB: loop body
LE: loop exit
PB: predicated region body
PF: predicated region fallthrough
CT: control target
= control target key end

     0   :  { %10 = vsyncpa [#allocation6], 0  ;;  %s477_s0 = inlined_call_operand.hbm [shape: f32[8,128], index: 0, kind: input, shape index: {}]   ;;  %s478_s1 = inlined_call_operand.hbm [shape: bf16[128,128], index: 1, kind: input, shape index: {}]   ;;  %s479_s2 = inlined_call_operand.vmem [shape: f32[1,128], index: 2, kind: input, shape index: {}]   ;;  %s480_s3 = inlined_call_operand.<no memory space> [shape: f32[1], index: 3, kind: input, shape index: {}]   ;;  %s481_s4 = inlined_call_operand.hbm [shape: f32[8,128], index: 4, kind: output, shape index: {}]  }
   0x1   :  { %11 = vsyncpa [#allocation9], 0 }
   0x2   :  { %12 = vsyncpa [#allocation7], 0  ;;  %s18_s17 = sshll.u32 %s477_s0, 4  ;;  %s425_s18 = smov [#allocation5]   ;;  %s19_s17 = int_to_ptr.hbm [resolvable:$true] %s18_s17 }
   0x3   :  { %s20_s19 = sshll.u32 %s425_s18, 4  ;;  %s28_s22 = sshll.u32 %s478_s1, 4  ;;  %s21_s19 = int_to_ptr.vmem [resolvable:$true] %s20_s19  ;;  %s29_s22 = int_to_ptr.hbm [resolvable:$true] %s28_s22 }
   0x4   :  { %23 = dma.hbm_to_vmem [thread:$0]  %s19_s17, 128, %s21_s19, [#allocation6]  }
   0x5   :  { %s426_s23 = smov [#allocation8]   ;;  %s427_s25 = smov 64  }
   0x6   :  { %s30_s24 = sshll.u32 %s426_s23, 4  ;;  %s428_s26 = smov 4   ;;  %s31_s24 = int_to_ptr.vmem [resolvable:$true] %s30_s24 }
   0x7   :  { %36 = dma.hbm_to_vmem [thread:$0]  %s29_s22, 1024, %s31_s24, [#allocation9], %s427_s25, %s427_s25, %s428_s26  }
   0x8   :  { %419 = dma.done.wait [#allocation6], 128  }
   0x9   :  { %420 = vsyncadd [#allocation6], 4294967168 }
   0xa   :  { %421 = dma.done.wait [#allocation9], 1024  }
   0xb   :  { %422 = vsyncadd [#allocation9], 4294966272  ;;  %v321_v0 = vld [vmem:[#allocation8 + $0x38] sm:$0xff]  ;;  %v320_v1 = vld [vmem:[#allocation8 + $0x30] sm:$0xff]  ;;  %vm54_vm0 = vcmask 7168   ;;  %v429_v11 = vmov 0.0  }
   0xc   :  { %123 = vmatpush.bf16.msra.mxu0 %v321_v0  ;;  %v56_v2 = vld [vmem:[#allocation5] sm:$0xff]  ;;  %v319_v4 = vld [vmem:[#allocation8 + $0x28] sm:$0xff]  ;;  %v318_v5 = vld [vmem:[#allocation8 + $0x20] sm:$0xff]  ;;  %55 = vst.msk [vmem:[#allocation3] sm:$0xff] %vm54_vm0, %v429_v11  ;;  %v430_v30 = vmov 0   ;;  %s270_s5 = sshll.u32 %s481_s4, 4  ;;  %s271_s5 = int_to_ptr.hbm [resolvable:$true] %s270_s5 }
   0xd   :  { %v139_v3 = vmul.f32 %v56_v2, %v56_v2  ;;  %v317_v6 = vld [vmem:[#allocation8 + $0x18] sm:$0xff]  ;;  %v316_v7 = vld [vmem:[#allocation8 + $0x10] sm:$0xff]  ;;  %v315_v8 = vld [vmem:[#allocation8 + $0x8] sm:$0xff]  ;;  %v58_v10 = vpack.c.bf16 %v56_v2, %v56_v2  ;;  %329 = vset.pattern.permute.xlu1 %v430_v30  ;;  %330 = vset.pattern.permute.xlu2 %v430_v30 }
   0xe   :  { %v314_v9 = vld [vmem:[#allocation8] sm:$0xff]  ;;  %331 = vset.pattern.permute.xlu0 %v430_v30 }
   0xf   :  { %140 = vadd.xlane.f32.xlu0 %v139_v3 }
  0x10   :  { %124 = vmatpush.bf16.msra.mxu0 %v320_v1  ;;  %v332_v1 = vld [vmem:[%s479_s2] ss:$0 sm:$0xff]  ;;  %s431_s2 = smov [#allocation10]  }
  0x13   :  { %v138_v13 = vld [vmem:[#allocation3] sm:$0xff] }
  0x14   :  { %125 = vmatpush.bf16.msra.mxu0 %v319_v4  ;;  %v223_v4 = vstv %s480_s3  ;;  %s268_s3 = sshll.u32 %s431_s2, 4  ;;  %s269_s3 = int_to_ptr.vmem [resolvable:$true] %s268_s3 }
  0x18   :  { %126 = vmatpush.bf16.msra.mxu0 %v318_v5 }
  0x1c   :  { %127 = vmatpush.bf16.msra.mxu0 %v317_v6 }
  0x20   :  { %128 = vmatpush.bf16.msra.mxu0 %v316_v7 }
  0x24   :  { %129 = vmatpush.bf16.msra.mxu0 %v315_v8 }
  0x28   :  { %130 = vmatpush.bf16.msra.mxu0 %v314_v9 }
  0x2b   :  { %131 = vmatmul.bf16.vlgmr.msra.gmra.mxu0 %v58_v10 }
  0x82   :  { %v141_v12 = vpop.xlane.xlu0 %140 }
  0x83   :  { %v142_v14 = vadd.f32 %v141_v12, %v138_v13 }
  0x85   :  { %144 = vst.msk [vmem:[#allocation3] sm:$0xff] %vm54_vm0, %v142_v14 }
  0x8c   :  { %v149_v18 = vld [vmem:[#allocation3] sm:$0xff] }
  0x8d   :  { %v153_v19 = vmax.f32 %v149_v18, 1e-30 }
  0x8f   :  { %333 = vrsqrt.f32 %v153_v19  ;;  %vm160_vm1 = vweird.f32 %v153_v19 }
  0x95   :  { %v334_v20 = vpop.eup %333 }
  0x96   :  { %v155_v21 = vmul.f32 %v334_v20, %v153_v19  ;;  %vm161_vm2 = vweird.f32 %v334_v20 }
  0x97   :  { %vm162_vm3 = vmor %vm160_vm1, %vm161_vm2 }
  0x98   :  { %v156_v22 = vmul.f32 %v334_v20, %v155_v21 }
  0x9a   :  { %v157_v23 = vmul.f32 0.5, %v156_v22 }
  0x9c   :  { %v158_v24 = vsub.f32 1.5, %v157_v23 }
  0x9e   :  { %v159_v25 = vmul.f32 %v334_v20, %v158_v24 }
  0xa0   :  { %v163_v26 = vsel %vm162_vm3, %v334_v20, %v159_v25 }
  0xa1   :  { %v175_v27 = vmul.f32 %v163_v26, %v149_v18 }
  0xa3   :  { %v313_v28 = vclamps-f32 %v175_v27, 0.9999999 }
  0xa5   :  { %v180_v29 = vsub.f32 1.0, %v313_v28  ;;  %v179_v42 = vadd.f32 1.0, %v313_v28 }
  0xa7   :  { %335 = vrcp.f32 %v180_v29  ;;  %vm186_vm4 = vweird.f32 %v180_v29  ;;  %v192_v35 = vand.u32 2147483648, %v180_v29  ;;  %v190_v37 = vand.u32 2147483647, %v180_v29 }
  0xa8   :  { %v463_v15 = vpop.f32.mrf.mxu0 }
  0xa9   :  { %v150_v16 = vmul.f32 %v463_v15, %v463_v15  ;;  %v193_v38 = vor.u32 1.1754944e-38, %v192_v35  ;;  %vm191_vm7 = vcmp.eq.f32.partialorder %v190_v37, 8.507059e+37 }
  0xab   :  { %151 = vadd.xlane.f32.xlu0 %v150_v16 }
  0xad   :  { %v336_v31 = vpop.eup %335 }
  0xae   :  { %v182_v32 = vmul.f32 %v336_v31, %v180_v29  ;;  %vm187_vm5 = vweird.f32 %v336_v31 }
  0xaf   :  { %vm188_vm6 = vmor %vm186_vm4, %vm187_vm5 }
  0xb0   :  { %v134_v17 = vpop.f32.mrf.mxu0  ;;  %v183_v33 = vsub.f32 1.0, %v182_v32 }
  0xb2   :  { %v184_v34 = vmul.f32 %v336_v31, %v183_v33 }
  0xb4   :  { %v185_v36 = vadd.f32 %v336_v31, %v184_v34 }
  0xb6   :  { %v189_v40 = vsel %vm188_vm6, %v336_v31, %v185_v36 }
  0xb7   :  { %v194_v43 = vsel %vm191_vm7, %v193_v38, %v189_v40 }
  0xb8   :  { %v195_v44 = vmul.f32 %v194_v43, %v179_v42 }
 0x11e   :  { %v152_v39 = vpop.xlane.xlu0 %151 }
 0x11f   :  { %v164_v41 = vmax.f32 %v152_v39, 1e-30  ;;  %vm203_vm11 = vcmp.eq.f32.partialorder %v152_v39, 0.0 }
 0x121   :  { %337 = vrsqrt.f32 %v164_v41  ;;  %vm171_vm9 = vweird.f32 %v164_v41 }
 0x122   :  { %339 = vlog2.f32 %v195_v44 }
 0x127   :  { %v338_v45 = vpop.eup %337 }
 0x128   :  { %v166_v46 = vmul.f32 %v338_v45, %v164_v41  ;;  %v340_v49 = vpop.eup %339  ;;  %vm172_vm8 = vweird.f32 %v338_v45 }
 0x129   :  { %vm173_vm10 = vmor %vm171_vm9, %vm172_vm8  ;;  %v197_v52 = vmul.f32 0.6931472, %v340_v49 }
 0x12a   :  { %v167_v47 = vmul.f32 %v338_v45, %v166_v46 }
 0x12b   :  { %v198_v55 = vmul.f32 0.5, %v197_v52 }
 0x12c   :  { %v168_v48 = vmul.f32 0.5, %v167_v47 }
 0x12e   :  { %v169_v50 = vsub.f32 1.5, %v168_v48 }
 0x130   :  { %v170_v51 = vmul.f32 %v338_v45, %v169_v50 }
 0x132   :  { %v174_v53 = vsel %vm173_vm10, %v338_v45, %v170_v51 }
 0x133   :  { %v176_v54 = vmul.f32 %v174_v53, %v152_v39 }
 0x135   :  { %v199_v56 = vmul.f32 %v176_v54, %v163_v26 }
 0x137   :  { %v200_v57 = vmul.f32 %v199_v56, %v198_v55 }
 0x139   :  { %341 = vtanh.f32 %v200_v57 }
 0x13f   :  { %v342_v58 = vpop.eup %341 }
 0x140   :  { %v202_v59 = vmin.f32 %v342_v58, 0.996 }
 0x142   :  { %v204_v60 = vsel %vm203_vm11, 0.0, %v202_v59 }
 0x143   :  { %v205_v61 = vmul.f32 %v204_v60, %v174_v53  ;;  %v214_v62 = vmul.f32 %v204_v60, %v204_v60 }
 0x145   :  { %208 = vperm.xlu1 %329, %v205_v61   ;;  %v226_v63 = vsub.f32 1.0, %v214_v62  ;;  %v234_v7 = vmul.f32 %v223_v4, %v214_v62 }
 0x147   :  { %229 = vperm.xlu2 %330, %v226_v63  }
 0x1a1   :  { %v230_v9 = vpop.permute.xlu2 %229 }
 0x1a2   :  { %v232_v12 = vmul.f32 %v332_v1, %v230_v9 }
 0x1b7   :  { %v209_v0 = vpop.permute.xlu1 %208 }
 0x1b8   :  { %v211_v2 = vmul.f32 %v209_v0, %v463_v15 }
 0x1ba   :  { %v218_v3 = vmul.f32 %v332_v1, %v211_v2 }
 0x1bc   :  { %219 = vadd.xlane.f32.xlu1 %v218_v3 }
 0x22f   :  { %v220_v5 = vpop.xlane.xlu1 %219 }
 0x230   :  { %v221_v6 = vmul.f32 2.0, %v220_v5 }
 0x232   :  { %v222_v8 = vadd.f32 1.0, %v221_v6 }
 0x234   :  { %v224_v10 = vadd.f32 %v223_v4, %v222_v8  ;;  %v235_v11 = vadd.f32 %v234_v7, %v222_v8 }
 0x236   :  { %v225_v13 = vmul.f32 %v224_v10, %v211_v2  ;;  %v236_v14 = vmax.f32 %v235_v11, 1e-15 }
 0x238   :  { %343 = vrcp.f32 %v236_v14  ;;  %v233_v16 = vadd.f32 %v232_v12, %v225_v13 }
 0x23e   :  { %v344_v17 = vpop.eup %343 }
 0x23f   :  { %240 = vperm.xlu2 %330, %v344_v17  }
 0x299   :  { %v241_v15 = vpop.permute.xlu2 %240 }
 0x29a   :  { %v243_v18 = vmul.f32 %v241_v15, %v233_v16 }
 0x29c   :  { %v244_v19 = vmul.f32 %v243_v18, %v243_v18 }
 0x29e   :  { %245 = vadd.xlane.f32.xlu0 %v244_v19 }
 0x311   :  { %v246_v20 = vpop.xlane.xlu0 %245 }
 0x312   :  { %v247_v21 = vmax.f32 %v246_v20, 1e-30  ;;  %vm258_vm15 = vcmp.gt.f32.partialorder %v246_v20, 0.992016 }
 0x314   :  { %345 = vrsqrt.f32 %v247_v21  ;;  %vm254_vm13 = vweird.f32 %v247_v21 }
 0x31a   :  { %v346_v22 = vpop.eup %345 }
 0x31b   :  { %v249_v23 = vmul.f32 %v346_v22, %v247_v21  ;;  %vm255_vm12 = vweird.f32 %v346_v22 }
 0x31c   :  { %vm256_vm14 = vmor %vm254_vm13, %vm255_vm12 }
 0x31d   :  { %v250_v24 = vmul.f32 %v346_v22, %v249_v23 }
 0x31f   :  { %v251_v25 = vmul.f32 0.5, %v250_v24 }
 0x321   :  { %v252_v26 = vsub.f32 1.5, %v251_v25 }
 0x323   :  { %v253_v27 = vmul.f32 %v346_v22, %v252_v26 }
 0x325   :  { %v257_v28 = vsel %vm256_vm14, %v346_v22, %v253_v27 }
 0x326   :  { %v259_v29 = vmul.f32 0.996, %v257_v28 }
 0x328   :  { %v260_v30 = vsel %vm258_vm15, %v259_v29, 1.0 }
 0x329   :  { %v261_v31 = vmul.f32 %v260_v30, %v243_v18 }
 0x32b   :  { %262 = vst [vmem:[#allocation10] sm:$0xff] %v261_v31 }
 0x32c   :  { %273 = dma.vmem_to_hbm [thread:$0]  %s269_s3, 128, %s271_s5, [#allocation7]  }
 0x32d   :  { %423 = dma.done.wait [#allocation7], 128  }
 0x32e   :  { %424 = vsyncadd [#allocation7], 4294967168 }
 0x32f   :  { %278 = vsyncpa [#allocation6], 1 }
 0x330   :  { %279 = vsyncpa [#allocation9], 1 }
 0x331   :  { %280 = vsyncpa [#allocation7], 1 }

</bundles_post_ra>
